<compile_context>
chip_gen: v7x
topology: tpu7x:2x2x1
jax: 0.10.0
libtpu: 0.0.40
codegen_flags: <defaults>
</compile_context>

<pallas_src>
import functools

import jax
import jax.numpy as jnp
from jax.experimental import pallas as pl
from jax.experimental.pallas import tpu as pltpu

NEG_SLOPE = 0.01  # nn.LeakyReLU default


def _leaky_relu(v):
    # max(v, a*v) == LeakyReLU for 0 < a < 1; one mul + one max on the VPU.
    return jnp.maximum(v, NEG_SLOPE * v)


def autoencoder_kernel(
    xt_ref,
    w1_ref, b1_ref,
    w2_ref, b2_ref,
    w3_ref, b3_ref,
    w4_ref, b4_ref,
    out_ref,
):
    """Fused 4-layer MLP forward on one (features, batch-tile) slab."""
    x = xt_ref[...]  # (D, tb) bf16 — streamed, no upcast

    # encoder
    h = jnp.dot(w1_ref[...], x, preferred_element_type=jnp.float32) + b1_ref[...]
    h = _leaky_relu(h).astype(jnp.bfloat16)
    h = jnp.dot(w2_ref[...], h, preferred_element_type=jnp.float32) + b2_ref[...]
    h = _leaky_relu(h).astype(jnp.bfloat16)

    # decoder
    h = jnp.dot(w3_ref[...], h, preferred_element_type=jnp.float32) + b3_ref[...]
    h = _leaky_relu(h).astype(jnp.bfloat16)
    h = jnp.dot(w4_ref[...], h, preferred_element_type=jnp.float32) + b4_ref[...]
    h = _leaky_relu(h)  # module applies LeakyReLU after the final Linear too

    out_ref[...] = h.astype(out_ref.dtype)


def _vmem_cap_bytes():
    """Generation-aware scoped-VMEM cap with a safe fallback."""
    try:
        info = pltpu.get_tpu_info()
        cap = int(getattr(info, "vmem_capacity_bytes"))
        # Leave ~25% headroom for compiler scratch; never ask for more than 96 MiB.
        # v7x (64 MiB physical) -> 48 MiB; v5e/v6e (128 MiB) -> 96 MiB.
        return max(16 << 20, min(int(cap * 3 // 4), 96 << 20))
    except Exception:
        return 48 << 20  # conservative: valid on every generation


def _pick_block_b(B, D, vmem_cap, in_bytes=2, out_bytes=2):
    """Choose the batch tile width from the VMEM budget and grid length."""
    if B <= 128:
        return B
    # Per batch column: double-buffered input tile + double-buffered output tile.
    per_col = max(1, D * 2 * (in_bytes + out_bytes))
    bb_vmem = (vmem_cap // 2) // per_col
    # >= 4 grid steps so v7x's 2 TCs each get >= 2 steps (keeps prefetch overlapped).
    bb_grid = max(B // 4, 128)
    bb = min(bb_vmem, bb_grid, 2048, B)
    bb = max(128, (bb // 128) * 128)
    return int(min(bb, B))


@functools.partial(jax.jit, static_argnames=("block_b", "out_dtype"))
def autoencoder_forward_t(xt, params, block_b=None, out_dtype=jnp.bfloat16):
    """Native-layout entry point.

    xt: (input_dim, B) bf16 — features on sublanes, batch on lanes.
    Returns (input_dim, B) in `out_dtype` (bf16 by default).
    """
    D, B = xt.shape
    E = params["w1"].shape[0]
    assert params["w1"].shape[1] == D
    assert params["w4"].shape == (D, E)

    vmem_cap = _vmem_cap_bytes()
    out_bytes = jnp.dtype(out_dtype).itemsize
    in_bytes = xt.dtype.itemsize
    if block_b is None:
        block_b = _pick_block_b(B, D, vmem_cap, in_bytes=in_bytes, out_bytes=out_bytes)
    block_b = min(block_b, B)
    grid = (pl.cdiv(B, block_b),)

    def full_spec(shape):
        # Constant index map -> resident in VMEM, no re-DMA per grid step.
        return pl.BlockSpec(shape, lambda i: tuple(0 for _ in shape))

    x_spec = pl.BlockSpec((D, block_b), lambda i: (0, i))
    out_spec = pl.BlockSpec((D, block_b), lambda i: (0, i))

    in_specs = [
        x_spec,
        full_spec(params["w1"].shape), full_spec(params["b1"].shape),
        full_spec(params["w2"].shape), full_spec(params["b2"].shape),
        full_spec(params["w3"].shape), full_spec(params["b3"].shape),
        full_spec(params["w4"].shape), full_spec(params["b4"].shape),
    ]

    # Advisory cost hint for XLA's scheduler.
    param_bytes = sum(int(p.size) * p.dtype.itemsize for p in params.values())
    flops = 2 * B * (2 * D * E + 2 * E * E)
    bytes_accessed = int(xt.size) * in_bytes + B * D * out_bytes + param_bytes
    cost = pl.CostEstimate(
        flops=flops, transcendentals=0, bytes_accessed=bytes_accessed
    )

    # VMEM budget: double-buffered x + out tiles + replicated weights, with
    # headroom, capped by the generation-aware physical limit.
    tile_bytes = D * block_b * (in_bytes + out_bytes)
    vmem_limit = min(
        vmem_cap,
        max(16 << 20, 4 * tile_bytes + 8 * param_bytes + (2 << 20)),
    )

    return pl.pallas_call(
        autoencoder_kernel,
        out_shape=jax.ShapeDtypeStruct((D, B), out_dtype),
        grid_spec=pltpu.PrefetchScalarGridSpec(
            num_scalar_prefetch=0,
            grid=grid,
            in_specs=in_specs,
            out_specs=out_spec,
        ),
        compiler_params=pltpu.CompilerParams(
            dimension_semantics=("parallel",),  # batch tiles shard across TCs (v7x)
            vmem_limit_bytes=int(vmem_limit),
        ),
        cost_estimate=cost,
    )(
        xt,
        params["w1"], params["b1"],
        params["w2"], params["b2"],
        params["w3"], params["b3"],
        params["w4"], params["b4"],
    )


def autoencoder_forward(x, params, block_b=None, out_dtype=jnp.bfloat16):
    """(B, input_dim) convenience wrapper matching the PyTorch interface.

    The two transposes are wrapper-side layout plumbing (full HBM read+write
    each); in a real pipeline keep activations in (features, batch) layout and
    call autoencoder_forward_t directly — the demo below does exactly that.
    """
    return autoencoder_forward_t(x.T, params, block_b=block_b, out_dtype=out_dtype).T


def init_params(key, input_dim, embedding_dim):
    """PyTorch-default-like Linear init: U(-1/sqrt(fan_in), 1/sqrt(fan_in)).

    Weights stored (out_features, in_features) in bf16 (MXU operands),
    biases stored (out_features, 1) in f32 (added to the f32 accumulator).
    """
    def linear(k, fan_in, fan_out):
        kw, kb = jax.random.split(k)
        bound = 1.0 / jnp.sqrt(fan_in)
        w = jax.random.uniform(kw, (fan_out, fan_in), jnp.float32, -bound, bound)
        b = jax.random.uniform(kb, (fan_out, 1), jnp.float32, -bound, bound)
        return w.astype(jnp.bfloat16), b

    k1, k2, k3, k4 = jax.random.split(key, 4)
    w1, b1 = linear(k1, input_dim, embedding_dim)      # encoder Linear 1
    w2, b2 = linear(k2, embedding_dim, embedding_dim)  # encoder Linear 2
    w3, b3 = linear(k3, embedding_dim, embedding_dim)  # decoder Linear 1
    w4, b4 = linear(k4, embedding_dim, input_dim)      # decoder Linear 2
    return dict(w1=w1, b1=b1, w2=w2, b2=b2, w3=w3, b3=b3, w4=w4, b4=b4)


def reference_forward_t(xt, params):
    """Pure-JAX reference in (D, B) layout mirroring the kernel numerics
    (bf16 matmul operands, f32 accumulation, f32 LeakyReLU)."""
    h = xt  # (D, B) bf16
    for i in (1, 2, 3, 4):
        w = params[f"w{i}"].astype(jnp.float32)   # (out, in)
        b = params[f"b{i}"]                        # (out, 1) f32
        y = jnp.dot(w, h.astype(jnp.float32), preferred_element_type=jnp.float32) + b
        y = _leaky_relu(y)
        h = y.astype(jnp.bfloat16) if i < 4 else y
    return h  # (D, B) f32


if __name__ == "__main__":
    input_dim = 32
    embedding_dim = 64
    batch = 2048  # 4 grid steps at block_b=512 -> >=2 steps per TC on v7x

    key = jax.random.PRNGKey(0)
    kx, kp = jax.random.split(key)
    # Build the input directly in the kernel's native (features, batch) layout
    # so there is no wrapper-side transpose.
    xt = jax.random.normal(kx, (input_dim, batch), jnp.float32).astype(jnp.bfloat16)
    params = init_params(kp, input_dim, embedding_dim)

    out = autoencoder_forward_t(xt, params)  # block_b auto-picked (512 here)
    out = jax.block_until_ready(out)

    ref = reference_forward_t(xt, params)
    assert out.shape == (input_dim, batch)
    assert out.dtype == jnp.bfloat16
    assert jnp.allclose(out.astype(jnp.float32), ref, atol=3e-2, rtol=3e-2), \
        "mismatch vs reference"

    print("KERNEL_OK")
</pallas_src>

<mosaic_0001>
module attributes {stable_mosaic.version = 11 : i64} {
  func.func @autoencoder_kernel(%arg0: i32, %arg1: memref<32x512xbf16, #tpu.memory_space<vmem>>, %arg2: memref<64x32xbf16, #tpu.memory_space<vmem>>, %arg3: memref<64x1xf32, #tpu.memory_space<vmem>>, %arg4: memref<64x64xbf16, #tpu.memory_space<vmem>>, %arg5: memref<64x1xf32, #tpu.memory_space<vmem>>, %arg6: memref<64x64xbf16, #tpu.memory_space<vmem>>, %arg7: memref<64x1xf32, #tpu.memory_space<vmem>>, %arg8: memref<32x64xbf16, #tpu.memory_space<vmem>>, %arg9: memref<32x1xf32, #tpu.memory_space<vmem>>, %arg10: memref<32x512xbf16, #tpu.memory_space<vmem>>) attributes {dimension_semantics = [#tpu.dimension_semantics<parallel>], iteration_bounds = array<i64: 4>, scalar_prefetch = 0 : i64, scratch_operands = 0 : i64, tpu.core_type = #tpu.core_type<tc>, window_params = [{transform_indices = @transform_0, window_bounds = array<i64: 32, 512>}, {pipeline_mode = #tpu.pipeline_mode<synchronous>, transform_indices = @transform_1, window_bounds = array<i64: 64, 32>}, {pipeline_mode = #tpu.pipeline_mode<synchronous>, transform_indices = @transform_2, window_bounds = array<i64: 64, 1>}, {pipeline_mode = #tpu.pipeline_mode<synchronous>, transform_indices = @transform_3, window_bounds = array<i64: 64, 64>}, {pipeline_mode = #tpu.pipeline_mode<synchronous>, transform_indices = @transform_4, window_bounds = array<i64: 64, 1>}, {pipeline_mode = #tpu.pipeline_mode<synchronous>, transform_indices = @transform_5, window_bounds = array<i64: 64, 64>}, {pipeline_mode = #tpu.pipeline_mode<synchronous>, transform_indices = @transform_6, window_bounds = array<i64: 64, 1>}, {pipeline_mode = #tpu.pipeline_mode<synchronous>, transform_indices = @transform_7, window_bounds = array<i64: 32, 64>}, {pipeline_mode = #tpu.pipeline_mode<synchronous>, transform_indices = @transform_8, window_bounds = array<i64: 32, 1>}, {transform_indices = @transform_9, window_bounds = array<i64: 32, 512>}]} {
    %c0 = arith.constant 0 : index
    %c0_0 = arith.constant 0 : index
    %0 = vector.load %arg1[%c0, %c0_0] : memref<32x512xbf16, #tpu.memory_space<vmem>>, vector<32x512xbf16>
    %c0_1 = arith.constant 0 : index
    %c0_2 = arith.constant 0 : index
    %1 = vector.load %arg2[%c0_1, %c0_2] : memref<64x32xbf16, #tpu.memory_space<vmem>>, vector<64x32xbf16>
    %cst = arith.constant dense<0.000000e+00> : vector<64x512xf32>
    %2 = tpu.matmul %1, %0, %cst {dimension_numbers = #tpu.dot_dimension_numbers<[1], [0], [0], [1], [0, 0, 1, 1], [], []>} : vector<64x32xbf16>, vector<32x512xbf16>, vector<64x512xf32> -> vector<64x512xf32>
    %c0_3 = arith.constant 0 : index
    %c0_4 = arith.constant 0 : index
    %3 = vector.load %arg3[%c0_3, %c0_4] : memref<64x1xf32, #tpu.memory_space<vmem>>, vector<64x1xf32>
    %4 = vector.broadcast %3 : vector<64x1xf32> to vector<64x512xf32>
    %5 = arith.addf %2, %4 : vector<64x512xf32>
    %cst_5 = arith.constant 0.00999999977 : f32
    %6 = vector.broadcast %cst_5 : f32 to vector<64x512xf32>
    %7 = arith.mulf %6, %5 : vector<64x512xf32>
    %8 = arith.maximumf %5, %7 : vector<64x512xf32>
    %9 = arith.truncf %8 : vector<64x512xf32> to vector<64x512xbf16>
    %c0_6 = arith.constant 0 : index
    %c0_7 = arith.constant 0 : index
    %10 = vector.load %arg4[%c0_6, %c0_7] : memref<64x64xbf16, #tpu.memory_space<vmem>>, vector<64x64xbf16>
    %cst_8 = arith.constant dense<0.000000e+00> : vector<64x512xf32>
    %11 = tpu.matmul %10, %9, %cst_8 {dimension_numbers = #tpu.dot_dimension_numbers<[1], [0], [0], [1], [0, 0, 1, 1], [], []>} : vector<64x64xbf16>, vector<64x512xbf16>, vector<64x512xf32> -> vector<64x512xf32>
    %c0_9 = arith.constant 0 : index
    %c0_10 = arith.constant 0 : index
    %12 = vector.load %arg5[%c0_9, %c0_10] : memref<64x1xf32, #tpu.memory_space<vmem>>, vector<64x1xf32>
    %13 = vector.broadcast %12 : vector<64x1xf32> to vector<64x512xf32>
    %14 = arith.addf %11, %13 : vector<64x512xf32>
    %cst_11 = arith.constant 0.00999999977 : f32
    %15 = vector.broadcast %cst_11 : f32 to vector<64x512xf32>
    %16 = arith.mulf %15, %14 : vector<64x512xf32>
    %17 = arith.maximumf %14, %16 : vector<64x512xf32>
    %18 = arith.truncf %17 : vector<64x512xf32> to vector<64x512xbf16>
    %c0_12 = arith.constant 0 : index
    %c0_13 = arith.constant 0 : index
    %19 = vector.load %arg6[%c0_12, %c0_13] : memref<64x64xbf16, #tpu.memory_space<vmem>>, vector<64x64xbf16>
    %cst_14 = arith.constant dense<0.000000e+00> : vector<64x512xf32>
    %20 = tpu.matmul %19, %18, %cst_14 {dimension_numbers = #tpu.dot_dimension_numbers<[1], [0], [0], [1], [0, 0, 1, 1], [], []>} : vector<64x64xbf16>, vector<64x512xbf16>, vector<64x512xf32> -> vector<64x512xf32>
    %c0_15 = arith.constant 0 : index
    %c0_16 = arith.constant 0 : index
    %21 = vector.load %arg7[%c0_15, %c0_16] : memref<64x1xf32, #tpu.memory_space<vmem>>, vector<64x1xf32>
    %22 = vector.broadcast %21 : vector<64x1xf32> to vector<64x512xf32>
    %23 = arith.addf %20, %22 : vector<64x512xf32>
    %cst_17 = arith.constant 0.00999999977 : f32
    %24 = vector.broadcast %cst_17 : f32 to vector<64x512xf32>
    %25 = arith.mulf %24, %23 : vector<64x512xf32>
    %26 = arith.maximumf %23, %25 : vector<64x512xf32>
    %27 = arith.truncf %26 : vector<64x512xf32> to vector<64x512xbf16>
    %c0_18 = arith.constant 0 : index
    %c0_19 = arith.constant 0 : index
    %28 = vector.load %arg8[%c0_18, %c0_19] : memref<32x64xbf16, #tpu.memory_space<vmem>>, vector<32x64xbf16>
    %cst_20 = arith.constant dense<0.000000e+00> : vector<32x512xf32>
    %29 = tpu.matmul %28, %27, %cst_20 {dimension_numbers = #tpu.dot_dimension_numbers<[1], [0], [0], [1], [0, 0, 1, 1], [], []>} : vector<32x64xbf16>, vector<64x512xbf16>, vector<32x512xf32> -> vector<32x512xf32>
    %c0_21 = arith.constant 0 : index
    %c0_22 = arith.constant 0 : index
    %30 = vector.load %arg9[%c0_21, %c0_22] : memref<32x1xf32, #tpu.memory_space<vmem>>, vector<32x1xf32>
    %31 = vector.broadcast %30 : vector<32x1xf32> to vector<32x512xf32>
    %32 = arith.addf %29, %31 : vector<32x512xf32>
    %cst_23 = arith.constant 0.00999999977 : f32
    %33 = vector.broadcast %cst_23 : f32 to vector<32x512xf32>
    %34 = arith.mulf %33, %32 : vector<32x512xf32>
    %35 = arith.maximumf %32, %34 : vector<32x512xf32>
    %36 = arith.truncf %35 : vector<32x512xf32> to vector<32x512xbf16>
    %c0_24 = arith.constant 0 : index
    %c0_25 = arith.constant 0 : index
    %37 = vector.load %arg10[%c0_24, %c0_25] : memref<32x512xbf16, #tpu.memory_space<vmem>>, vector<32x512xbf16>
    tpu.vector_store %arg10[%c0_24, %c0_25], %36 {strides = array<i32>} : memref<32x512xbf16, #tpu.memory_space<vmem>>, vector<32x512xbf16>,
    return
  }
  func.func @transform_0(%arg0: i32) -> (i32, i32) {
    %c0_i32 = arith.constant 0 : i32
    %c0_i32_0 = arith.constant 0 : i32
    return %c0_i32, %arg0 : i32, i32
  }
  func.func @transform_1(%arg0: i32) -> (i32, i32) {
    %c0_i32 = arith.constant 0 : i32
    %c0_i32_0 = arith.constant 0 : i32
    %c0_i32_1 = arith.constant 0 : i32
    return %c0_i32, %c0_i32_0 : i32, i32
  }
  func.func @transform_2(%arg0: i32) -> (i32, i32) {
    %c0_i32 = arith.constant 0 : i32
    %c0_i32_0 = arith.constant 0 : i32
    %c0_i32_1 = arith.constant 0 : i32
    return %c0_i32, %c0_i32_0 : i32, i32
  }
  func.func @transform_3(%arg0: i32) -> (i32, i32) {
    %c0_i32 = arith.constant 0 : i32
    %c0_i32_0 = arith.constant 0 : i32
    %c0_i32_1 = arith.constant 0 : i32
    return %c0_i32, %c0_i32_0 : i32, i32
  }
  func.func @transform_4(%arg0: i32) -> (i32, i32) {
    %c0_i32 = arith.constant 0 : i32
    %c0_i32_0 = arith.constant 0 : i32
    %c0_i32_1 = arith.constant 0 : i32
    return %c0_i32, %c0_i32_0 : i32, i32
  }
  func.func @transform_5(%arg0: i32) -> (i32, i32) {
    %c0_i32 = arith.constant 0 : i32
    %c0_i32_0 = arith.constant 0 : i32
    %c0_i32_1 = arith.constant 0 : i32
    return %c0_i32, %c0_i32_0 : i32, i32
  }
  func.func @transform_6(%arg0: i32) -> (i32, i32) {
    %c0_i32 = arith.constant 0 : i32
    %c0_i32_0 = arith.constant 0 : i32
    %c0_i32_1 = arith.constant 0 : i32
    return %c0_i32, %c0_i32_0 : i32, i32
  }
  func.func @transform_7(%arg0: i32) -> (i32, i32) {
    %c0_i32 = arith.constant 0 : i32
    %c0_i32_0 = arith.constant 0 : i32
    %c0_i32_1 = arith.constant 0 : i32
    return %c0_i32, %c0_i32_0 : i32, i32
  }
  func.func @transform_8(%arg0: i32) -> (i32, i32) {
    %c0_i32 = arith.constant 0 : i32
    %c0_i32_0 = arith.constant 0 : i32
    %c0_i32_1 = arith.constant 0 : i32
    return %c0_i32, %c0_i32_0 : i32, i32
  }
  func.func @transform_9(%arg0: i32) -> (i32, i32) {
    %c0_i32 = arith.constant 0 : i32
    %c0_i32_0 = arith.constant 0 : i32
    return %c0_i32, %arg0 : i32, i32
  }
}

</mosaic_0001>

<bundles_post_ra>
// kernel: autoencoder_forward_t.1
= control target key start
LH: loop header
LB: loop body
LE: loop exit
PB: predicated region body
PF: predicated region fallthrough
CT: control target
= control target key end

     0   :  { %14 = vsyncpa [#allocation4], 0  ;;  %s2366_s0 = inlined_call_operand.vmem [shape: bf16[32,2048], index: 0, kind: input, shape index: {}]   ;;  %s2367_s1 = inlined_call_operand.vmem [shape: bf16[64,32], index: 1, kind: input, shape index: {}]   ;;  %s2368_s2 = inlined_call_operand.vmem [shape: f32[64,1], index: 2, kind: input, shape index: {}]   ;;  %s2369_s3 = inlined_call_operand.vmem [shape: bf16[64,64], index: 3, kind: input, shape index: {}]   ;;  %s2370_s4 = inlined_call_operand.vmem [shape: f32[64,1], index: 4, kind: input, shape index: {}]   ;;  %s2371_s5 = inlined_call_operand.hbm [shape: bf16[64,64], index: 5, kind: input, shape index: {}]   ;;  %s2372_s6 = inlined_call_operand.vmem [shape: f32[64,1], index: 6, kind: input, shape index: {}]   ;;  %s2373_s7 = inlined_call_operand.vmem [shape: bf16[32,64], index: 7, kind: input, shape index: {}]   ;;  %s2374_s8 = inlined_call_operand.vmem [shape: f32[32,1], index: 8, kind: input, shape index: {}]   ;;  %s2375_s9 = inlined_call_operand.hbm [shape: bf16[32,2048], index: 9, kind: output, shape index: {}]  }
   0x1   :  { %15 = vsyncpa [#allocation5], 0 }
   0x2   :  { %17 = vsyncpa [#allocation5 + $0x1], 0  ;;  %s2029_s30 = smov 0   ;;  %s2031_s10 = smov 0  }
   0x3   :  { %s2033_s11 = smov 0   ;;  %s2035_s12 = smov 0  }
   0x4 LB: > { %s2050_s13 = sadd.s32 4294967295, %s1969_s12   ;;  %s1707_s14 = sadd.s32 4294967294, %s1969_s12   ;;  %s1969_s12 = sphi %s2035_s12, %s2394_s12   ;;  %s1965_s11 = sphi %s2033_s11, %s2398_s11   ;;  %s1961_s10 = sphi %s2031_s10, %s2397_s10   ;;  %s1957_s30 = sphi %s2029_s30, %s2396_s30  }
   0x5   : > { %s2054_s15 = sadd.s32 1, %s1969_s12   ;;  %s30_s16 = sadd.s32 1, %s1965_s11 }
   0x6   : > { %2381 = sst [smem:[#allocation9_spill]] %s2054_s15  ;;  %s27_s17 = ssub.s32 %s1969_s12, %s2054_s15 }
   0x7   : > { %p37_p0 = scmp.ne.s32.totalorder %s1965_s11, %s1961_s10  ;;  %p28_p1 = scmp.eq.s32.totalorder %s27_s17, 0 }
   0x8   : > { %p38_p2 = scmp.eq.s32.totalorder %s1969_s12, 0  ;;  %p235_p3 = scmp.eq.s32.totalorder %s2050_s13, 3 }
   0x9   : > { %p240_p4 = scmp.ne.s32.totalorder %s1961_s10, %s1957_s30  ;;  %p241_p7 = scmp.eq.s32.totalorder %s1707_s14, 3 }
   0xa   : > { %s2066_s18 = scalar_select %p28_p1, %s1965_s11, %s30_s16  }
   0xb   : > { %p2068_p5 = por %p38_p2, %p37_p0  ;;  %p2072_p6 = por %p235_p3, %p37_p0 }
   0xc   : > { %2382 = sst [smem:[#allocation10_spill]] %s2066_s18  ;;  %p1708_p8 = scmp.ge.s32.totalorder %s1969_s12, 1 }
   0xd   : > { %s2383_s19 = scalar_select %p2068_p5, 1, 0 }
   0xe   : > { %s2384_s20 = scalar_select %p2072_p6, 1, 0 }
   0xf   : > { %p248_p9 = scmp.lt.s32.totalorder %s1969_s12, 5  ;;  %p2078_p10 = por %p241_p7, %p240_p4 }
  0x10   : > { %p2376_p11 = scmp.eq.s32.totalorder %s2050_s13, 0  ;;  %s1971_s23 = smov [#allocation3]  }
  0x11   : > { %s2385_s21 = scalar_select %p2078_p10, 1, 0 }
  0x12   : > { %p2083_p12 = pnand %p1708_p8, %p248_p9  ;;  %s272_s24 = sshll.u32 %s1971_s23, 4  ;;  %s273_s24 = int_to_ptr.vmem [resolvable:$true] %s272_s24 }
  0x13   : > { %s1875_s28 = scalar_lea.hbm %s2371_s5, 512 }
  0x14   : > { %s2386_s22 = scalar_select %p2083_p12, 1, 0 }
  0x15   : > { %p1797_p13 = pneg %p2083_p12  ;;  %p1876_p1 = scmp.ne.s32.totalorder %s2371_s5, %s1875_s28 }
  0x16   : > { %p1882_p7 = scmp.lt.u32.totalorder %s1875_s28, %s2371_s5 }
  0x17   : > { %p2091_p0 = pnand %p2376_p11, %p1797_p13 }
  0x19   : > { %p1877_p2 = pneg %p2091_p0 }
  0x1b   : > { %p1878_p3 = pnand %p1877_p2, %p1876_p1 }
  0x1d   : > { %p1879_p4 = pneg %p1878_p3 }
  0x1f   : > { %p1884_p8 = pnand %p1882_p7, %p1879_p4 }
  0x21   : > { %1887 = shalt.err (!%p1884_p8)
}
  0x22   : > { %s1888_s23 = scalar_lea.vmem %s273_s24, 512  ;;  %p1896_p10 = scmp.lt.s32.totalorder %s273_s24, %s273_s24 }
  0x23   : > { %p1889_p9 = scmp.ne.s32.totalorder %s273_s24, %s1888_s23  ;;  %p1897_p6 = scmp.lt.s32.totalorder %s1888_s23, %s1888_s23 }
  0x25   : > { %p1891_p13 = pnand %p1889_p9, %p1877_p2  ;;  %p1898_p12 = por %p1897_p6, %p1896_p10 }
  0x27   : > { %p1892_p11 = pneg %p1891_p13 }
  0x29   : > { %p1899_p5 = pnand %p1898_p12, %p1892_p11 }
  0x2b   : > { %1902 = shalt.err (!%p1899_p5)
}
  0x2c   : > { %s1972_s26 = smov 64   ;;  %s1973_s27 = smov 4  }
  0x2d   : > { %1800 = dma.hbm_to_vmem [thread:$0]  (!%p2091_p0), %s2371_s5, 512, %s273_s24, [#allocation4], %s1972_s26, %s1972_s26, %s1973_s27  }
  0x2e   : > { %p1710_p1 = scmp.ge.s32.totalorder %s1969_s12, 4 }
  0x2f   : > { %p2388_p3 = scmp.ne.s32.totalorder (!%p1710_p1), %s2383_s19, 0 }
  0x30   : > { %291 = sbr.rel (%p1710_p1) target bundleno = 63 (0x3f), region = 48 }
  0x37   : > { %294 = sbr.rel (!%p2388_p3) target bundleno = 63 (0x3f), region = 52  ;;  %s296_s28 = sand.u32 (%p2388_p3), 1, %s1965_s11  }
  0x38   : > { %s1781_s16 = sshll.u32 (%p2388_p3), %s1969_s12, 4  ;;  %s1711_s17 = sshll.u32 (%p2388_p3), %s296_s28, 6 }
  0x39   : > { %s301_s15 = scalar_lea.vmem (%p2388_p3), %s2366_s0, %s1781_s16  ;;  %s298_s25 = scalar_lea.vmem (%p2388_p3), [#allocation2], %s1711_s17 }
  0x3a   : > { %v314_v0 = vld [vmem:[%s301_s15] sm:$0xff] (%p2388_p3)  ;;  %v316_v1 = vld [vmem:[%s301_s15 + $0x8] sm:$0xff] (%p2388_p3) }
  0x3b   : > { %v318_v2 = vld [vmem:[%s301_s15 + $0x40] sm:$0xff] (%p2388_p3)  ;;  %315 = vst [vmem:[%s298_s25] sm:$0xff] (%p2388_p3), %v314_v0  ;;  %317 = vst [vmem:[%s298_s25 + $0x8] sm:$0xff] (%p2388_p3), %v316_v1  ;;  %v320_v3 = vld [vmem:[%s301_s15 + $0x48] sm:$0xff] (%p2388_p3) }
  0x3c   : > { %319 = vst [vmem:[%s298_s25 + $0x10] sm:$0xff] (%p2388_p3), %v318_v2  ;;  %v322_v4 = vld [vmem:[%s301_s15 + $0x80] sm:$0xff] (%p2388_p3)  ;;  %v324_v5 = vld [vmem:[%s301_s15 + $0x88] sm:$0xff] (%p2388_p3)  ;;  %321 = vst [vmem:[%s298_s25 + $0x18] sm:$0xff] (%p2388_p3), %v320_v3 }
  0x3d   : > { %323 = vst [vmem:[%s298_s25 + $0x20] sm:$0xff] (%p2388_p3), %v322_v4  ;;  %325 = vst [vmem:[%s298_s25 + $0x28] sm:$0xff] (%p2388_p3), %v324_v5  ;;  %v326_v6 = vld [vmem:[%s301_s15 + $0xc0] sm:$0xff] (%p2388_p3)  ;;  %v328_v7 = vld [vmem:[%s301_s15 + $0xc8] sm:$0xff] (%p2388_p3) }
  0x3e   : > { %327 = vst [vmem:[%s298_s25 + $0x30] sm:$0xff] %v326_v6  ;;  %329 = vst [vmem:[%s298_s25 + $0x38] sm:$0xff] %v328_v7 }
  0x3f PF: > { %p2389_p5 = scmp.ne.s32.totalorder %s2386_s22, 0 }
  0x40   : > { %s341_s18 = sand.u32 (!%p2389_p5), 1, %s1961_s10   ;;  %p2390_p6 = scmp.eq.s32.totalorder (!%p2389_p5), %s2050_s13, 0 }
  0x41   : > { %338 = sbr.rel (%p2389_p5) target bundleno = 1084 (0x43c), region = 75  ;;  %s2124_s19 = sshll.u32 (!%p2389_p5), %s341_s18, 6 }
  0x42   : > { %s343_s24 = scalar_lea.vmem (!%p2389_p5), [#allocation2], %s2124_s19 }
  0x48   : > { %1948 = dma.done.wait (%p2390_p6), [#allocation4], 512   ;;  %p2391_p10 = pmov %p2390_p6 }
  0x49   : > { %v1974_v8 = vmov 0   ;;  %v1849_v9 = vld [vmem:[%s343_s24 + $0x4] ss:$16 sps:$4 sm:$0xff]   ;;  %v1851_v10 = vld [vmem:[%s343_s24 + $0xc] ss:$16 sps:$4 sm:$0xff]   ;;  %vm507_vm0 = vcmask 261120  }
  0x4a   : > { %1950 = vsyncadd (%p2391_p10), [#allocation4], 4294966784  ;;  %552 = vmatprep.mubr.bf16.mxu0 %v1974_v8  ;;  %625 = vmatprep.mubr.bf16.mxu1 %v1974_v8  ;;  %v1853_v11 = vld [vmem:[%s343_s24] ss:$16 sps:$4 sm:$0xff]   ;;  %v1854_v12 = vld [vmem:[%s343_s24 + $0x8] ss:$16 sps:$4 sm:$0xff]  }
  0x4b   : > { %1847 = vset.pattern.permute.xlu0 %v1974_v8  ;;  %1848 = vset.pattern.permute.xlu1 %v1974_v8  ;;  %v1855_v13 = vld [vmem:[%s343_s24 + $0x24] ss:$16 sps:$4 sm:$0xff]   ;;  %v1857_v14 = vld [vmem:[%s343_s24 + $0x2c] ss:$16 sps:$4 sm:$0xff]   ;;  %v1859_v15 = vld [vmem:[%s343_s24 + $0x20] ss:$16 sps:$4 sm:$0xff]  }
  0x4c   : > { %520 = vmatprep.subr.bf16.mxu0 %v1849_v9  ;;  %593 = vmatprep.subr.bf16.mxu1 %v1851_v10  ;;  %v1860_v16 = vld [vmem:[%s343_s24 + $0x28] ss:$16 sps:$4 sm:$0xff]   ;;  %v1861_v17 = vld [vmem:[%s2367_s1] sm:$0xff]   ;;  %v401_v19 = vld [vmem:[%s2368_s2 + $0x10] sm:$0xff]  ;;  %vm822_vm1 = vcmask 523264   ;;  %s2304_s29 = scalar_lea.vmem [#allocation6], %s2124_s19 }
  0x4d   : > { %521 = vmatpush1.bf16.msra.mxu0 %v1853_v11  ;;  %594 = vmatpush1.bf16.msra.mxu1 %v1854_v12  ;;  %v399_v18 = vld [vmem:[%s2368_s2] sm:$0xff]  ;;  %v400_v20 = vld [vmem:[%s2368_s2 + $0x8] sm:$0xff]  ;;  %v402_v21 = vld [vmem:[%s2368_s2 + $0x18] sm:$0xff]  ;;  %s1627_s19 = sshll.u32 %s2304_s29, 4  ;;  %s1790_s14 = sshll.u32 %s2050_s13, 8  ;;  %s2312_s19 = int_to_ptr.vmem [resolvable:$true] %s1627_s19 }
  0x4e   : > { %522 = vmatprep.subr.bf16.mxu0 %v1855_v13  ;;  %595 = vmatprep.subr.bf16.mxu1 %v1857_v14  ;;  %v1862_v22 = vld [vmem:[%s2367_s1 + $0x8] sm:$0xff]   ;;  %v403_v23 = vld [vmem:[%s2368_s2 + $0x20] sm:$0xff]  ;;  %v405_v24 = vld [vmem:[%s2368_s2 + $0x30] sm:$0xff]  ;;  %s2317_s17 = scalar_lea.hbm %s2375_s9, %s1790_s14  ;;  %s2325_s13 = scalar_lea.sflag [#allocation5], %s341_s18 }
  0x4f   : > { %409 = vperm.xlu0 %1847, %v399_v18   ;;  %419 = vperm.xlu1 %1848, %v401_v19   ;;  %v404_v25 = vld [vmem:[%s2368_s2 + $0x28] sm:$0xff]  ;;  %v406_v26 = vld [vmem:[%s2368_s2 + $0x38] sm:$0xff]  ;;  %v1863_v27 = vld [vmem:[%s2367_s1 + $0x10] sm:$0xff]   ;;  %s1903_s23 = scalar_lea.vmem %s2312_s19, 1024  ;;  %p2392_p12 = scmp.ne.s32.totalorder %s2384_s20, 0 }
  0x50   : > { %v754_v28 = vld [vmem:[%s2370_s4] sm:$0xff]  ;;  %v755_v29 = vld [vmem:[%s2370_s4 + $0x8] sm:$0xff]  ;;  %v756_v30 = vld [vmem:[%s2370_s4 + $0x10] sm:$0xff]  ;;  %p1904_p11 = scmp.ne.s32.totalorder %s2312_s19, %s1903_s23  ;;  %s1975_s25 = smov [#allocation6]  }
  0x51   : > { %523 = vmatpush1.bf16.msra.mxu0 %v1859_v15  ;;  %596 = vmatpush1.bf16.msra.mxu1 %v1860_v16  ;;  %v757_v31 = vld [vmem:[%s2370_s4 + $0x18] sm:$0xff]  ;;  %v758_v33 = vld [vmem:[%s2370_s4 + $0x20] sm:$0xff]  ;;  %v759_v34 = vld [vmem:[%s2370_s4 + $0x28] sm:$0xff]  ;;  %s1907_s24 = sshll.u32 %s1975_s25, 4  ;;  %s1908_s24 = int_to_ptr.vmem [resolvable:$false] %s1907_s24 }
  0x52   : > { %v1864_v32 = vld [vmem:[%s2367_s1 + $0x18] sm:$0xff]   ;;  %v760_v35 = vld [vmem:[%s2370_s4 + $0x30] sm:$0xff]  ;;  %v1069_v37 = vld [vmem:[%s2372_s6] sm:$0xff]  ;;  %p1905_p0 = pnand %p1904_p11, %p2392_p12  ;;  %s1909_s15 = scalar_lea.vmem %s1908_s24, 2048 }
  0x53   : > { %414 = vperm.xlu0 %1847, %v400_v20   ;;  %424 = vperm.xlu1 %1848, %v402_v21   ;;  %v761_v36 = vld [vmem:[%s2370_s4 + $0x38] sm:$0xff]  ;;  %v1070_v38 = vld [vmem:[%s2372_s6 + $0x8] sm:$0xff]  ;;  %v1071_v39 = vld [vmem:[%s2372_s6 + $0x10] sm:$0xff]  ;;  %p1910_p4 = scmp.lt.s32.totalorder %s2312_s19, %s1908_s24  ;;  %p1911_p7 = scmp.lt.s32.totalorder %s1909_s15, %s1903_s23 }
  0x54   : > { %1730 = vmatmul.mubr.msk.bf16.vlgmr.msra.gmra.mrb[0].mxu0 %vm507_vm0, %v1861_v17  ;;  %1734 = vmatmul.mubr.msk.bf16.vlgmr.msra.gmra.mrb[0].mxu1 %vm507_vm0, %v1861_v17  ;;  %v1072_v40 = vld [vmem:[%s2372_s6 + $0x18] sm:$0xff]  ;;  %v1073_v41 = vld [vmem:[%s2372_s6 + $0x20] sm:$0xff]  ;;  %v1074_v42 = vld [vmem:[%s2372_s6 + $0x28] sm:$0xff]  ;;  %p1906_p2 = pneg %p1905_p0 }
  0x55   : > { %562 = vmatprep.mubr.bf16.mxu0 %v1974_v8  ;;  %635 = vmatprep.mubr.bf16.mxu1 %v1974_v8  ;;  %v1075_v43 = vld [vmem:[%s2372_s6 + $0x30] sm:$0xff]  ;;  %v1076_v44 = vld [vmem:[%s2372_s6 + $0x38] sm:$0xff]  ;;  %v1379_v45 = vld [vmem:[%s2374_s8] sm:$0xff]  ;;  %p1912_p8 = por %p1911_p7, %p1910_p4 }
  0x56   : > { %v1380_v46 = vld [vmem:[%s2374_s8 + $0x8] sm:$0xff]  ;;  %v1381_v47 = vld [vmem:[%s2374_s8 + $0x10] sm:$0xff]  ;;  %v1382_v48 = vld [vmem:[%s2374_s8 + $0x18] sm:$0xff] }
  0x57   : > { %429 = vperm.xlu0 %1847, %v403_v23   ;;  %434 = vperm.xlu1 %1848, %v404_v25   ;;  %p1913_p9 = pnand %p1912_p8, %p1906_p2 }
  0x5b   : > { %439 = vperm.xlu0 %1847, %v405_v24   ;;  %444 = vperm.xlu1 %1848, %v406_v26  }
  0x5c   : > { %1731 = vmatmul.mubr.msk.bf16.gmra.mrb[4].mxu0 %vm507_vm0, %v1862_v22  ;;  %1735 = vmatmul.mubr.msk.bf16.gmra.mrb[4].mxu1 %vm507_vm0, %v1862_v22 }
  0x5d   : > { %572 = vmatprep.mubr.bf16.mxu0 %v1974_v8  ;;  %645 = vmatprep.mubr.bf16.mxu1 %v1974_v8 }
  0x5f   : > { %764 = vperm.xlu0 %1847, %v754_v28   ;;  %769 = vperm.xlu1 %1848, %v755_v29  }
  0x63   : > { %774 = vperm.xlu0 %1847, %v756_v30   ;;  %779 = vperm.xlu1 %1848, %v757_v31  }
  0x64   : > { %1732 = vmatmul.mubr.msk.bf16.gmra.mrb[8].mxu0 %vm507_vm0, %v1863_v27  ;;  %1736 = vmatmul.mubr.msk.bf16.gmra.mrb[8].mxu1 %vm507_vm0, %v1863_v27 }
  0x65   : > { %582 = vmatprep.mubr.bf16.mxu0 %v1974_v8  ;;  %655 = vmatprep.mubr.bf16.mxu1 %v1974_v8 }
  0x67   : > { %784 = vperm.xlu0 %1847, %v758_v33   ;;  %789 = vperm.xlu1 %1848, %v759_v34  }
  0x6b   : > { %794 = vperm.xlu0 %1847, %v760_v35   ;;  %799 = vperm.xlu1 %1848, %v761_v36  }
  0x6c   : > { %1733 = vmatmul.mubr.msk.bf16.gmra.mrb[12].mxu0 %vm507_vm0, %v1864_v32  ;;  %1737 = vmatmul.mubr.msk.bf16.gmra.mrb[12].mxu1 %vm507_vm0, %v1864_v32 }
  0x6d   : > { %867 = vmatprep.mubr.bf16.mxu0 %v1974_v8  ;;  %940 = vmatprep.mubr.bf16.mxu1 %v1974_v8 }
  0x6f   : > { %1079 = vperm.xlu0 %1847, %v1069_v37   ;;  %1084 = vperm.xlu1 %1848, %v1070_v38  }
  0x73   : > { %1089 = vperm.xlu0 %1847, %v1071_v39   ;;  %1094 = vperm.xlu1 %1848, %v1072_v40  }
  0x77   : > { %1099 = vperm.xlu0 %1847, %v1073_v41   ;;  %1104 = vperm.xlu1 %1848, %v1074_v42  }
  0x7b   : > { %1109 = vperm.xlu0 %1847, %v1075_v43   ;;  %1114 = vperm.xlu1 %1848, %v1076_v44  }
  0x7f   : > { %1385 = vperm.xlu0 %1847, %v1379_v45   ;;  %1390 = vperm.xlu1 %1848, %v1380_v46  }
  0x83   : > { %1395 = vperm.xlu0 %1847, %v1381_v47   ;;  %1400 = vperm.xlu1 %1848, %v1382_v48  }
  0xce   : > { %v410_v49 = vpop.permute.xlu0 %409  ;;  %v420_v51 = vpop.permute.xlu1 %419 }
  0xd2   : > { %v415_v50 = vpop.permute.xlu0 %414  ;;  %v425_v13 = vpop.permute.xlu1 %424 }
 0x127   : > { %v554_v52 = vpop.f32.mrb[0].mxu0  ;;  %v627_v53 = vpop.f32.mrb[0].mxu1 }
 0x128   : > { %v555_v54 = vadd.f32 %v554_v52, %v410_v49  ;;  %v628_v55 = vadd.f32 %v627_v53, %v410_v49  ;;  %v556_v56 = vpop.f32.mrb[1].mxu0  ;;  %v629_v57 = vpop.f32.mrb[1].mxu1 }
 0x129   : > { %v557_v58 = vadd.f32 %v556_v56, %v410_v49  ;;  %v630_v59 = vadd.f32 %v629_v57, %v410_v49  ;;  %v558_v60 = vpop.f32.mrb[2].mxu0  ;;  %v631_v61 = vpop.f32.mrb[2].mxu1 }
 0x12a   : > { %v666_v62 = vmul.f32 0.01, %v555_v54  ;;  %v668_v63 = vmul.f32 0.01, %v628_v55  ;;  %v559_v0 = vadd.f32 %v558_v60, %v415_v50  ;;  %v632_v1 = vadd.f32 %v631_v61, %v415_v50  ;;  %v560_v2 = vpop.f32.mrb[3].mxu0  ;;  %v633_v3 = vpop.f32.mrb[3].mxu1 }
 0x12b   : > { %v667_v4 = vmul.f32 0.01, %v557_v58  ;;  %v669_v5 = vmul.f32 0.01, %v630_v59  ;;  %v561_v6 = vadd.f32 %v560_v2, %v415_v50  ;;  %v634_v7 = vadd.f32 %v633_v3, %v415_v50  ;;  %v430_v50 = vpop.permute.xlu0 %429 }
 0x12c   : > { %v670_v9 = vmul.f32 0.01, %v559_v0  ;;  %v672_v10 = vmul.f32 0.01, %v632_v1  ;;  %v698_v14 = vmax.f32 %v555_v54, %v666_v62  ;;  %v700_v15 = vmax.f32 %v628_v55, %v668_v63 }
 0x12d   : > { %v671_v11 = vmul.f32 0.01, %v561_v6  ;;  %v673_v12 = vmul.f32 0.01, %v634_v7  ;;  %v699_v18 = vmax.f32 %v557_v58, %v667_v4  ;;  %v701_v19 = vmax.f32 %v630_v59, %v669_v5 }
 0x12e   : > { %v702_v16 = vmax.f32 %v559_v0, %v670_v9  ;;  %v704_v17 = vmax.f32 %v632_v1, %v672_v10 }
 0x12f   : > { %v703_v20 = vmax.f32 %v561_v6, %v671_v11  ;;  %v705_v21 = vmax.f32 %v634_v7, %v673_v12  ;;  %v564_v22 = vpop.f32.mrb[4].mxu0  ;;  %v637_v23 = vpop.f32.mrb[4].mxu1 }
 0x130   : > { %v730_v24 = vpack.c.bf16 %v702_v16, %v698_v14  ;;  %v732_v25 = vpack.c.bf16 %v704_v17, %v700_v15  ;;  %v565_v26 = vadd.f32 %v564_v22, %v420_v51  ;;  %v638_v27 = vadd.f32 %v637_v23, %v420_v51  ;;  %v566_v28 = vpop.f32.mrb[5].mxu0  ;;  %v639_v29 = vpop.f32.mrb[5].mxu1 }
 0x131   : > { %v567_v30 = vadd.f32 %v566_v28, %v420_v51  ;;  %v640_v31 = vadd.f32 %v639_v29, %v420_v51  ;;  %v568_v32 = vpop.f32.mrb[6].mxu0  ;;  %v641_v33 = vpop.f32.mrb[6].mxu1  ;;  %v731_v34 = vpack.c.bf16 %v703_v20, %v699_v18  ;;  %v733_v35 = vpack.c.bf16 %v705_v21, %v701_v19 }
 0x132   : > { %v674_v36 = vmul.f32 0.01, %v565_v26  ;;  %v676_v37 = vmul.f32 0.01, %v638_v27  ;;  %v569_v38 = vadd.f32 %v568_v32, %v425_v13  ;;  %v642_v39 = vadd.f32 %v641_v33, %v425_v13  ;;  %v570_v40 = vpop.f32.mrb[7].mxu0  ;;  %v643_v41 = vpop.f32.mrb[7].mxu1 }
 0x133   : > { %v675_v42 = vmul.f32 0.01, %v567_v30  ;;  %v677_v43 = vmul.f32 0.01, %v640_v31  ;;  %v571_v44 = vadd.f32 %v570_v40, %v425_v13  ;;  %v644_v45 = vadd.f32 %v643_v41, %v425_v13  ;;  %835 = vmatprep.subr.bf16.mxu0 %v731_v34  ;;  %908 = vmatprep.subr.bf16.mxu1 %v733_v35  ;;  %v435_v51 = vpop.permute.xlu1 %434 }
 0x134   : > { %v678_v46 = vmul.f32 0.01, %v569_v38  ;;  %v680_v47 = vmul.f32 0.01, %v642_v39  ;;  %836 = vmatpush1.bf16.msra.mxu0 %v730_v24  ;;  %909 = vmatpush1.bf16.msra.mxu1 %v732_v25  ;;  %v706_v52 = vmax.f32 %v565_v26, %v674_v36  ;;  %v708_v53 = vmax.f32 %v638_v27, %v676_v37  ;;  %v440_v25 = vpop.permute.xlu0 %439 }
 0x135   : > { %v679_v48 = vmul.f32 0.01, %v571_v44  ;;  %v681_v49 = vmul.f32 0.01, %v644_v45  ;;  %v707_v56 = vmax.f32 %v567_v30, %v675_v42  ;;  %v709_v57 = vmax.f32 %v640_v31, %v677_v43 }
 0x136   : > { %v710_v54 = vmax.f32 %v569_v38, %v678_v46  ;;  %v712_v55 = vmax.f32 %v642_v39, %v680_v47 }
 0x137   : > { %v711_v58 = vmax.f32 %v571_v44, %v679_v48  ;;  %v713_v59 = vmax.f32 %v644_v45, %v681_v49  ;;  %v574_v60 = vpop.f32.mrb[8].mxu0  ;;  %v647_v61 = vpop.f32.mrb[8].mxu1 }
 0x138   : > { %v734_v62 = vpack.c.bf16 %v710_v54, %v706_v52  ;;  %v736_v63 = vpack.c.bf16 %v712_v55, %v708_v53  ;;  %v575_v0 = vadd.f32 %v574_v60, %v430_v50  ;;  %v648_v1 = vadd.f32 %v647_v61, %v430_v50  ;;  %v576_v2 = vpop.f32.mrb[9].mxu0  ;;  %v649_v3 = vpop.f32.mrb[9].mxu1 }
 0x139   : > { %v577_v4 = vadd.f32 %v576_v2, %v430_v50  ;;  %v650_v5 = vadd.f32 %v649_v3, %v430_v50  ;;  %v578_v6 = vpop.f32.mrb[10].mxu0  ;;  %v651_v7 = vpop.f32.mrb[10].mxu1  ;;  %v735_v9 = vpack.c.bf16 %v711_v58, %v707_v56  ;;  %v737_v10 = vpack.c.bf16 %v713_v59, %v709_v57 }
 0x13a   : > { %v682_v11 = vmul.f32 0.01, %v575_v0  ;;  %v684_v12 = vmul.f32 0.01, %v648_v1  ;;  %v579_v13 = vadd.f32 %v578_v6, %v435_v51  ;;  %v652_v14 = vadd.f32 %v651_v7, %v435_v51  ;;  %v580_v15 = vpop.f32.mrb[11].mxu0  ;;  %v653_v16 = vpop.f32.mrb[11].mxu1 }
 0x13b   : > { %v683_v17 = vmul.f32 0.01, %v577_v4  ;;  %v685_v18 = vmul.f32 0.01, %v650_v5  ;;  %v581_v19 = vadd.f32 %v580_v15, %v435_v51  ;;  %v654_v20 = vadd.f32 %v653_v16, %v435_v51  ;;  %837 = vmatprep.subr.bf16.mxu0 %v735_v9  ;;  %910 = vmatprep.subr.bf16.mxu1 %v737_v10  ;;  %v445_v26 = vpop.permute.xlu1 %444  ;;  %v1868_v15 = vld [vmem:[%s2369_s3 + $0x18] sm:$0xff]   ;;  %v765_v16 = vpop.permute.xlu0 %764 }
 0x13c   : > { %v686_v21 = vmul.f32 0.01, %v579_v13  ;;  %v688_v22 = vmul.f32 0.01, %v652_v14  ;;  %838 = vmatpush1.bf16.msra.mxu0 %v734_v62  ;;  %911 = vmatpush1.bf16.msra.mxu1 %v736_v63  ;;  %v714_v27 = vmax.f32 %v575_v0, %v682_v11  ;;  %v716_v28 = vmax.f32 %v648_v1, %v684_v12  ;;  %v1865_v12 = vld [vmem:[%s2369_s3] sm:$0xff]  }
 0x13d   : > { %v687_v23 = vmul.f32 0.01, %v581_v19  ;;  %v689_v24 = vmul.f32 0.01, %v654_v20  ;;  %v715_v31 = vmax.f32 %v577_v4, %v683_v17  ;;  %v717_v32 = vmax.f32 %v650_v5, %v685_v18 }
 0x13e   : > { %v718_v29 = vmax.f32 %v579_v13, %v686_v21  ;;  %v720_v30 = vmax.f32 %v652_v14, %v688_v22  ;;  %v1866_v13 = vld [vmem:[%s2369_s3 + $0x8] sm:$0xff]   ;;  %v1867_v14 = vld [vmem:[%s2369_s3 + $0x10] sm:$0xff]  }
 0x13f   : > { %v719_v33 = vmax.f32 %v581_v19, %v687_v23  ;;  %v721_v34 = vmax.f32 %v654_v20, %v689_v24  ;;  %v584_v35 = vpop.f32.mrb[12].mxu0  ;;  %v657_v36 = vpop.f32.mrb[12].mxu1 }
 0x140   : > { %v738_v37 = vpack.c.bf16 %v718_v29, %v714_v27  ;;  %v740_v38 = vpack.c.bf16 %v720_v30, %v716_v28  ;;  %v585_v39 = vadd.f32 %v584_v35, %v440_v25  ;;  %v658_v40 = vadd.f32 %v657_v36, %v440_v25  ;;  %v586_v41 = vpop.f32.mrb[13].mxu0  ;;  %v659_v42 = vpop.f32.mrb[13].mxu1 }
 0x141   : > { %v587_v43 = vadd.f32 %v586_v41, %v440_v25  ;;  %v660_v44 = vadd.f32 %v659_v42, %v440_v25  ;;  %v588_v45 = vpop.f32.mrb[14].mxu0  ;;  %v661_v46 = vpop.f32.mrb[14].mxu1  ;;  %v739_v47 = vpack.c.bf16 %v719_v33, %v715_v31  ;;  %v741_v48 = vpack.c.bf16 %v721_v34, %v717_v32 }
 0x142   : > { %v690_v49 = vmul.f32 0.01, %v585_v39  ;;  %v692_v50 = vmul.f32 0.01, %v658_v40  ;;  %v589_v51 = vadd.f32 %v588_v45, %v445_v26  ;;  %v662_v52 = vadd.f32 %v661_v46, %v445_v26  ;;  %v590_v53 = vpop.f32.mrb[15].mxu0  ;;  %v663_v54 = vpop.f32.mrb[15].mxu1 }
 0x143   : > { %v691_v55 = vmul.f32 0.01, %v587_v43  ;;  %v693_v56 = vmul.f32 0.01, %v660_v44  ;;  %v591_v57 = vadd.f32 %v590_v53, %v445_v26  ;;  %v664_v58 = vadd.f32 %v663_v54, %v445_v26  ;;  %839 = vmatprep.subr.bf16.mxu0 %v739_v47  ;;  %912 = vmatprep.subr.bf16.mxu1 %v741_v48  ;;  %v770_v17 = vpop.permute.xlu1 %769  ;;  %v775_v42 = vpop.permute.xlu0 %774 }
 0x144   : > { %v694_v59 = vmul.f32 0.01, %v589_v51  ;;  %v696_v60 = vmul.f32 0.01, %v662_v52  ;;  %840 = vmatpush1.bf16.msra.mxu0 %v738_v37  ;;  %913 = vmatpush1.bf16.msra.mxu1 %v740_v38  ;;  %v722_v63 = vmax.f32 %v585_v39, %v690_v49  ;;  %v724_v0 = vmax.f32 %v658_v40, %v692_v50 }
 0x145   : > { %v695_v61 = vmul.f32 0.01, %v591_v57  ;;  %v697_v62 = vmul.f32 0.01, %v664_v58  ;;  %v723_v3 = vmax.f32 %v587_v43, %v691_v55  ;;  %v725_v4 = vmax.f32 %v660_v44, %v693_v56 }
 0x146   : > { %v726_v1 = vmax.f32 %v589_v51, %v694_v59  ;;  %v728_v2 = vmax.f32 %v662_v52, %v696_v60 }
 0x147   : > { %v727_v5 = vmax.f32 %v591_v57, %v695_v61  ;;  %v729_v6 = vmax.f32 %v664_v58, %v697_v62  ;;  %v780_v43 = vpop.permute.xlu1 %779 }
 0x148   : > { %v742_v7 = vpack.c.bf16 %v726_v1, %v722_v63  ;;  %v744_v9 = vpack.c.bf16 %v728_v2, %v724_v0 }
 0x149   : > { %v743_v10 = vpack.c.bf16 %v727_v5, %v723_v3  ;;  %v745_v11 = vpack.c.bf16 %v729_v6, %v725_v4 }
 0x14b   : > { %841 = vmatprep.subr.bf16.mxu0 %v743_v10  ;;  %914 = vmatprep.subr.bf16.mxu1 %v745_v11 }
 0x14c   : > { %842 = vmatpush1.bf16.msra.mxu0 %v742_v7  ;;  %915 = vmatpush1.bf16.msra.mxu1 %v744_v9 }
 0x14f   : > { %1742 = vmatmul.mubr.msk.bf16.vlgmr.msra.gmra.mrb[16].mxu0 %vm822_vm1, %v1865_v12  ;;  %1746 = vmatmul.mubr.msk.bf16.vlgmr.msra.gmra.mrb[16].mxu1 %vm822_vm1, %v1865_v12 }
 0x150   : > { %877 = vmatprep.mubr.bf16.mxu0 %v1974_v8  ;;  %950 = vmatprep.mubr.bf16.mxu1 %v1974_v8 }
 0x157   : > { %1743 = vmatmul.mubr.msk.bf16.gmra.mrb[20].mxu0 %vm822_vm1, %v1866_v13  ;;  %1747 = vmatmul.mubr.msk.bf16.gmra.mrb[20].mxu1 %vm822_vm1, %v1866_v13 }
 0x158   : > { %887 = vmatprep.mubr.bf16.mxu0 %v1974_v8  ;;  %960 = vmatprep.mubr.bf16.mxu1 %v1974_v8 }
 0x15f   : > { %1744 = vmatmul.mubr.msk.bf16.gmra.mrb[24].mxu0 %vm822_vm1, %v1867_v14  ;;  %1748 = vmatmul.mubr.msk.bf16.gmra.mrb[24].mxu1 %vm822_vm1, %v1867_v14 }
 0x160   : > { %897 = vmatprep.mubr.bf16.mxu0 %v1974_v8  ;;  %970 = vmatprep.mubr.bf16.mxu1 %v1974_v8 }
 0x167   : > { %1745 = vmatmul.mubr.msk.bf16.gmra.mrb[28].mxu0 %vm822_vm1, %v1868_v15  ;;  %1749 = vmatmul.mubr.msk.bf16.gmra.mrb[28].mxu1 %vm822_vm1, %v1868_v15 }
 0x168   : > { %1181 = vmatprep.mubr.bf16.mxu0 %v1974_v8  ;;  %1254 = vmatprep.mubr.bf16.mxu1 %v1974_v8 }
 0x222   : > { %v869_v18 = vpop.f32.mrb[16].mxu0  ;;  %v942_v19 = vpop.f32.mrb[16].mxu1 }
 0x223   : > { %v870_v20 = vadd.f32 %v869_v18, %v765_v16  ;;  %v943_v21 = vadd.f32 %v942_v19, %v765_v16  ;;  %v871_v22 = vpop.f32.mrb[17].mxu0  ;;  %v944_v23 = vpop.f32.mrb[17].mxu1 }
 0x224   : > { %v872_v24 = vadd.f32 %v871_v22, %v765_v16  ;;  %v945_v25 = vadd.f32 %v944_v23, %v765_v16  ;;  %v873_v26 = vpop.f32.mrb[18].mxu0  ;;  %v946_v27 = vpop.f32.mrb[18].mxu1 }
 0x225   : > { %v981_v28 = vmul.f32 0.01, %v870_v20  ;;  %v983_v29 = vmul.f32 0.01, %v943_v21  ;;  %v874_v30 = vadd.f32 %v873_v26, %v770_v17  ;;  %v947_v31 = vadd.f32 %v946_v27, %v770_v17  ;;  %v875_v32 = vpop.f32.mrb[19].mxu0  ;;  %v948_v33 = vpop.f32.mrb[19].mxu1 }
 0x226   : > { %v982_v34 = vmul.f32 0.01, %v872_v24  ;;  %v984_v35 = vmul.f32 0.01, %v945_v25  ;;  %v876_v36 = vadd.f32 %v875_v32, %v770_v17  ;;  %v949_v37 = vadd.f32 %v948_v33, %v770_v17  ;;  %v785_v17 = vpop.permute.xlu0 %784  ;;  %v790_v18 = vpop.permute.xlu1 %789 }
 0x227   : > { %v985_v38 = vmul.f32 0.01, %v874_v30  ;;  %v987_v39 = vmul.f32 0.01, %v947_v31  ;;  %v1013_v44 = vmax.f32 %v870_v20, %v981_v28  ;;  %v1015_v45 = vmax.f32 %v943_v21, %v983_v29 }
 0x228   : > { %v986_v40 = vmul.f32 0.01, %v876_v36  ;;  %v988_v41 = vmul.f32 0.01, %v949_v37  ;;  %v1014_v48 = vmax.f32 %v872_v24, %v982_v34  ;;  %v1016_v49 = vmax.f32 %v945_v25, %v984_v35 }
 0x229   : > { %v1017_v46 = vmax.f32 %v874_v30, %v985_v38  ;;  %v1019_v47 = vmax.f32 %v947_v31, %v987_v39 }
 0x22a   : > { %v1018_v50 = vmax.f32 %v876_v36, %v986_v40  ;;  %v1020_v51 = vmax.f32 %v949_v37, %v988_v41  ;;  %v879_v52 = vpop.f32.mrb[20].mxu0  ;;  %v952_v53 = vpop.f32.mrb[20].mxu1 }
 0x22b   : > { %v1045_v54 = vpack.c.bf16 %v1017_v46, %v1013_v44  ;;  %v1047_v55 = vpack.c.bf16 %v1019_v47, %v1015_v45  ;;  %v880_v56 = vadd.f32 %v879_v52, %v775_v42  ;;  %v953_v57 = vadd.f32 %v952_v53, %v775_v42  ;;  %v881_v58 = vpop.f32.mrb[21].mxu0  ;;  %v954_v59 = vpop.f32.mrb[21].mxu1 }
 0x22c   : > { %v882_v60 = vadd.f32 %v881_v58, %v775_v42  ;;  %v955_v61 = vadd.f32 %v954_v59, %v775_v42  ;;  %v883_v62 = vpop.f32.mrb[22].mxu0  ;;  %v956_v63 = vpop.f32.mrb[22].mxu1  ;;  %v1046_v0 = vpack.c.bf16 %v1018_v50, %v1014_v48  ;;  %v1048_v1 = vpack.c.bf16 %v1020_v51, %v1016_v49 }
 0x22d   : > { %v989_v2 = vmul.f32 0.01, %v880_v56  ;;  %v991_v3 = vmul.f32 0.01, %v953_v57  ;;  %v884_v4 = vadd.f32 %v883_v62, %v780_v43  ;;  %v957_v5 = vadd.f32 %v956_v63, %v780_v43  ;;  %v885_v6 = vpop.f32.mrb[23].mxu0  ;;  %v958_v7 = vpop.f32.mrb[23].mxu1 }
 0x22e   : > { %v990_v9 = vmul.f32 0.01, %v882_v60  ;;  %v992_v10 = vmul.f32 0.01, %v955_v61  ;;  %v886_v11 = vadd.f32 %v885_v6, %v780_v43  ;;  %v959_v12 = vadd.f32 %v958_v7, %v780_v43  ;;  %1149 = vmatprep.subr.bf16.mxu0 %v1046_v0  ;;  %1222 = vmatprep.subr.bf16.mxu1 %v1048_v1 }
 0x22f   : > { %v993_v13 = vmul.f32 0.01, %v884_v4  ;;  %v995_v14 = vmul.f32 0.01, %v957_v5  ;;  %1150 = vmatpush1.bf16.msra.mxu0 %v1045_v54  ;;  %1223 = vmatpush1.bf16.msra.mxu1 %v1047_v55  ;;  %v1021_v19 = vmax.f32 %v880_v56, %v989_v2  ;;  %v1023_v20 = vmax.f32 %v953_v57, %v991_v3  ;;  %v795_v55 = vpop.permute.xlu0 %794  ;;  %v800_v56 = vpop.permute.xlu1 %799 }
 0x230   : > { %v994_v15 = vmul.f32 0.01, %v886_v11  ;;  %v996_v16 = vmul.f32 0.01, %v959_v12  ;;  %v1022_v23 = vmax.f32 %v882_v60, %v990_v9  ;;  %v1024_v24 = vmax.f32 %v955_v61, %v992_v10 }
 0x231   : > { %v1025_v21 = vmax.f32 %v884_v4, %v993_v13  ;;  %v1027_v22 = vmax.f32 %v957_v5, %v995_v14 }
 0x232   : > { %v1026_v25 = vmax.f32 %v886_v11, %v994_v15  ;;  %v1028_v26 = vmax.f32 %v959_v12, %v996_v16  ;;  %v889_v27 = vpop.f32.mrb[24].mxu0  ;;  %v962_v28 = vpop.f32.mrb[24].mxu1 }
 0x233   : > { %v1049_v29 = vpack.c.bf16 %v1025_v21, %v1021_v19  ;;  %v1051_v30 = vpack.c.bf16 %v1027_v22, %v1023_v20  ;;  %v890_v31 = vadd.f32 %v889_v27, %v785_v17  ;;  %v963_v32 = vadd.f32 %v962_v28, %v785_v17  ;;  %v891_v33 = vpop.f32.mrb[25].mxu0  ;;  %v964_v34 = vpop.f32.mrb[25].mxu1 }
 0x234   : > { %v892_v35 = vadd.f32 %v891_v33, %v785_v17  ;;  %v965_v36 = vadd.f32 %v964_v34, %v785_v17  ;;  %v893_v37 = vpop.f32.mrb[26].mxu0  ;;  %v966_v38 = vpop.f32.mrb[26].mxu1  ;;  %v1050_v39 = vpack.c.bf16 %v1026_v25, %v1022_v23  ;;  %v1052_v40 = vpack.c.bf16 %v1028_v26, %v1024_v24 }
 0x235   : > { %v997_v41 = vmul.f32 0.01, %v890_v31  ;;  %v999_v42 = vmul.f32 0.01, %v963_v32  ;;  %v894_v43 = vadd.f32 %v893_v37, %v790_v18  ;;  %v967_v44 = vadd.f32 %v966_v38, %v790_v18  ;;  %v895_v45 = vpop.f32.mrb[27].mxu0  ;;  %v968_v46 = vpop.f32.mrb[27].mxu1 }
 0x236   : > { %v998_v47 = vmul.f32 0.01, %v892_v35  ;;  %v1000_v48 = vmul.f32 0.01, %v965_v36  ;;  %v896_v49 = vadd.f32 %v895_v45, %v790_v18  ;;  %v969_v50 = vadd.f32 %v968_v46, %v790_v18  ;;  %1151 = vmatprep.subr.bf16.mxu0 %v1050_v39  ;;  %1224 = vmatprep.subr.bf16.mxu1 %v1052_v40  ;;  %v1872_v45 = vld [vmem:[#allocation3 + $0x18] sm:$0xff]   ;;  %v1080_v46 = vpop.permute.xlu0 %1079 }
 0x237   : > { %v1001_v51 = vmul.f32 0.01, %v894_v43  ;;  %v1003_v52 = vmul.f32 0.01, %v967_v44  ;;  %1152 = vmatpush1.bf16.msra.mxu0 %v1049_v29  ;;  %1225 = vmatpush1.bf16.msra.mxu1 %v1051_v30  ;;  %v1029_v57 = vmax.f32 %v890_v31, %v997_v41  ;;  %v1031_v58 = vmax.f32 %v963_v32, %v999_v42  ;;  %v1869_v42 = vld [vmem:[#allocation3] sm:$0xff]  }
 0x238   : > { %v1002_v53 = vmul.f32 0.01, %v896_v49  ;;  %v1004_v54 = vmul.f32 0.01, %v969_v50  ;;  %v1030_v61 = vmax.f32 %v892_v35, %v998_v47  ;;  %v1032_v62 = vmax.f32 %v965_v36, %v1000_v48  ;;  %v1085_v47 = vpop.permute.xlu1 %1084 }
 0x239   : > { %v1033_v59 = vmax.f32 %v894_v43, %v1001_v51  ;;  %v1035_v60 = vmax.f32 %v967_v44, %v1003_v52  ;;  %v1870_v43 = vld [vmem:[#allocation3 + $0x8] sm:$0xff]   ;;  %v1871_v44 = vld [vmem:[#allocation3 + $0x10] sm:$0xff]  }
 0x23a   : > { %v1034_v63 = vmax.f32 %v896_v49, %v1002_v53  ;;  %v1036_v0 = vmax.f32 %v969_v50, %v1004_v54  ;;  %v899_v1 = vpop.f32.mrb[28].mxu0  ;;  %v972_v2 = vpop.f32.mrb[28].mxu1 }
 0x23b   : > { %v1053_v3 = vpack.c.bf16 %v1033_v59, %v1029_v57  ;;  %v1055_v4 = vpack.c.bf16 %v1035_v60, %v1031_v58  ;;  %v900_v5 = vadd.f32 %v899_v1, %v795_v55  ;;  %v973_v6 = vadd.f32 %v972_v2, %v795_v55  ;;  %v901_v7 = vpop.f32.mrb[29].mxu0  ;;  %v974_v9 = vpop.f32.mrb[29].mxu1 }
 0x23c   : > { %v902_v10 = vadd.f32 %v901_v7, %v795_v55  ;;  %v975_v11 = vadd.f32 %v974_v9, %v795_v55  ;;  %v903_v12 = vpop.f32.mrb[30].mxu0  ;;  %v976_v13 = vpop.f32.mrb[30].mxu1  ;;  %v1054_v14 = vpack.c.bf16 %v1034_v63, %v1030_v61  ;;  %v1056_v15 = vpack.c.bf16 %v1036_v0, %v1032_v62 }
 0x23d   : > { %v1005_v16 = vmul.f32 0.01, %v900_v5  ;;  %v1007_v17 = vmul.f32 0.01, %v973_v6  ;;  %v904_v18 = vadd.f32 %v903_v12, %v800_v56  ;;  %v977_v19 = vadd.f32 %v976_v13, %v800_v56  ;;  %v905_v20 = vpop.f32.mrb[31].mxu0  ;;  %v978_v21 = vpop.f32.mrb[31].mxu1 }
 0x23e   : > { %v1006_v22 = vmul.f32 0.01, %v902_v10  ;;  %v1008_v23 = vmul.f32 0.01, %v975_v11  ;;  %v906_v24 = vadd.f32 %v905_v20, %v800_v56  ;;  %v979_v25 = vadd.f32 %v978_v21, %v800_v56  ;;  %1153 = vmatprep.subr.bf16.mxu0 %v1054_v14  ;;  %1226 = vmatprep.subr.bf16.mxu1 %v1056_v15  ;;  %v1090_v9 = vpop.permute.xlu0 %1089 }
 0x23f   : > { %v1009_v26 = vmul.f32 0.01, %v904_v18  ;;  %v1011_v27 = vmul.f32 0.01, %v977_v19  ;;  %1154 = vmatpush1.bf16.msra.mxu0 %v1053_v3  ;;  %1227 = vmatpush1.bf16.msra.mxu1 %v1055_v4  ;;  %v1037_v30 = vmax.f32 %v900_v5, %v1005_v16  ;;  %v1039_v31 = vmax.f32 %v973_v6, %v1007_v17 }
 0x240   : > { %v1010_v28 = vmul.f32 0.01, %v906_v24  ;;  %v1012_v29 = vmul.f32 0.01, %v979_v25  ;;  %v1038_v34 = vmax.f32 %v902_v10, %v1006_v22  ;;  %v1040_v35 = vmax.f32 %v975_v11, %v1008_v23  ;;  %v1095_v10 = vpop.permute.xlu1 %1094 }
 0x241   : > { %v1041_v32 = vmax.f32 %v904_v18, %v1009_v26  ;;  %v1043_v33 = vmax.f32 %v977_v19, %v1011_v27 }
 0x242   : > { %v1042_v36 = vmax.f32 %v906_v24, %v1010_v28  ;;  %v1044_v37 = vmax.f32 %v979_v25, %v1012_v29 }
 0x243   : > { %v1057_v38 = vpack.c.bf16 %v1041_v32, %v1037_v30  ;;  %v1059_v39 = vpack.c.bf16 %v1043_v33, %v1039_v31 }
 0x244   : > { %v1058_v40 = vpack.c.bf16 %v1042_v36, %v1038_v34  ;;  %v1060_v41 = vpack.c.bf16 %v1044_v37, %v1040_v35 }
 0x246   : > { %1155 = vmatprep.subr.bf16.mxu0 %v1058_v40  ;;  %1228 = vmatprep.subr.bf16.mxu1 %v1060_v41 }
 0x247   : > { %1156 = vmatpush1.bf16.msra.mxu0 %v1057_v38  ;;  %1229 = vmatpush1.bf16.msra.mxu1 %v1059_v39 }
 0x24a   : > { %1754 = vmatmul.mubr.msk.bf16.vlgmr.msra.gmra.mrb[32].mxu0 %vm822_vm1, %v1869_v42  ;;  %1758 = vmatmul.mubr.msk.bf16.vlgmr.msra.gmra.mrb[32].mxu1 %vm822_vm1, %v1869_v42 }
 0x24b   : > { %1191 = vmatprep.mubr.bf16.mxu0 %v1974_v8  ;;  %1264 = vmatprep.mubr.bf16.mxu1 %v1974_v8 }
 0x252   : > { %1755 = vmatmul.mubr.msk.bf16.gmra.mrb[36].mxu0 %vm822_vm1, %v1870_v43  ;;  %1759 = vmatmul.mubr.msk.bf16.gmra.mrb[36].mxu1 %vm822_vm1, %v1870_v43 }
 0x253   : > { %1201 = vmatprep.mubr.bf16.mxu0 %v1974_v8  ;;  %1274 = vmatprep.mubr.bf16.mxu1 %v1974_v8 }
 0x25a   : > { %1756 = vmatmul.mubr.msk.bf16.gmra.mrb[40].mxu0 %vm822_vm1, %v1871_v44  ;;  %1760 = vmatmul.mubr.msk.bf16.gmra.mrb[40].mxu1 %vm822_vm1, %v1871_v44 }
 0x25b   : > { %1211 = vmatprep.mubr.bf16.mxu0 %v1974_v8  ;;  %1284 = vmatprep.mubr.bf16.mxu1 %v1974_v8 }
 0x262   : > { %1757 = vmatmul.mubr.msk.bf16.gmra.mrb[44].mxu0 %vm822_vm1, %v1872_v45  ;;  %1761 = vmatmul.mubr.msk.bf16.gmra.mrb[44].mxu1 %vm822_vm1, %v1872_v45 }
 0x263   : > { %1451 = vmatprep.mubr.bf16.mxu0 %v1974_v8  ;;  %1504 = vmatprep.mubr.bf16.mxu1 %v1974_v8 }
 0x31d   : > { %v1183_v48 = vpop.f32.mrb[32].mxu0  ;;  %v1256_v49 = vpop.f32.mrb[32].mxu1 }
 0x31e   : > { %v1184_v50 = vadd.f32 %v1183_v48, %v1080_v46  ;;  %v1257_v51 = vadd.f32 %v1256_v49, %v1080_v46  ;;  %v1185_v52 = vpop.f32.mrb[33].mxu0  ;;  %v1258_v53 = vpop.f32.mrb[33].mxu1 }
 0x31f   : > { %v1186_v54 = vadd.f32 %v1185_v52, %v1080_v46  ;;  %v1259_v55 = vadd.f32 %v1258_v53, %v1080_v46  ;;  %v1187_v56 = vpop.f32.mrb[34].mxu0  ;;  %v1260_v57 = vpop.f32.mrb[34].mxu1 }
 0x320   : > { %v1295_v58 = vmul.f32 0.01, %v1184_v50  ;;  %v1297_v59 = vmul.f32 0.01, %v1257_v51  ;;  %v1188_v60 = vadd.f32 %v1187_v56, %v1085_v47  ;;  %v1261_v61 = vadd.f32 %v1260_v57, %v1085_v47  ;;  %v1189_v62 = vpop.f32.mrb[35].mxu0  ;;  %v1262_v63 = vpop.f32.mrb[35].mxu1 }
 0x321   : > { %v1296_v0 = vmul.f32 0.01, %v1186_v54  ;;  %v1298_v1 = vmul.f32 0.01, %v1259_v55  ;;  %v1190_v2 = vadd.f32 %v1189_v62, %v1085_v47  ;;  %v1263_v3 = vadd.f32 %v1262_v63, %v1085_v47  ;;  %v1100_v47 = vpop.permute.xlu0 %1099  ;;  %v1105_v48 = vpop.permute.xlu1 %1104 }
 0x322   : > { %v1299_v4 = vmul.f32 0.01, %v1188_v60  ;;  %v1301_v5 = vmul.f32 0.01, %v1261_v61  ;;  %v1327_v11 = vmax.f32 %v1184_v50, %v1295_v58  ;;  %v1329_v12 = vmax.f32 %v1257_v51, %v1297_v59 }
 0x323   : > { %v1300_v6 = vmul.f32 0.01, %v1190_v2  ;;  %v1302_v7 = vmul.f32 0.01, %v1263_v3  ;;  %v1328_v15 = vmax.f32 %v1186_v54, %v1296_v0  ;;  %v1330_v16 = vmax.f32 %v1259_v55, %v1298_v1 }
 0x324   : > { %v1331_v13 = vmax.f32 %v1188_v60, %v1299_v4  ;;  %v1333_v14 = vmax.f32 %v1261_v61, %v1301_v5 }
 0x325   : > { %v1332_v17 = vmax.f32 %v1190_v2, %v1300_v6  ;;  %v1334_v18 = vmax.f32 %v1263_v3, %v1302_v7  ;;  %v1193_v19 = vpop.f32.mrb[36].mxu0  ;;  %v1266_v20 = vpop.f32.mrb[36].mxu1 }
 0x326   : > { %v1359_v21 = vpack.c.bf16 %v1331_v13, %v1327_v11  ;;  %v1361_v22 = vpack.c.bf16 %v1333_v14, %v1329_v12  ;;  %v1194_v23 = vadd.f32 %v1193_v19, %v1090_v9  ;;  %v1267_v24 = vadd.f32 %v1266_v20, %v1090_v9  ;;  %v1195_v25 = vpop.f32.mrb[37].mxu0  ;;  %v1268_v26 = vpop.f32.mrb[37].mxu1 }
 0x327   : > { %v1196_v27 = vadd.f32 %v1195_v25, %v1090_v9  ;;  %v1269_v28 = vadd.f32 %v1268_v26, %v1090_v9  ;;  %v1197_v29 = vpop.f32.mrb[38].mxu0  ;;  %v1270_v30 = vpop.f32.mrb[38].mxu1  ;;  %v1360_v31 = vpack.c.bf16 %v1332_v17, %v1328_v15  ;;  %v1362_v32 = vpack.c.bf16 %v1334_v18, %v1330_v16 }
 0x328   : > { %v1303_v33 = vmul.f32 0.01, %v1194_v23  ;;  %v1305_v34 = vmul.f32 0.01, %v1267_v24  ;;  %v1198_v35 = vadd.f32 %v1197_v29, %v1095_v10  ;;  %v1271_v36 = vadd.f32 %v1270_v30, %v1095_v10  ;;  %v1199_v37 = vpop.f32.mrb[39].mxu0  ;;  %v1272_v38 = vpop.f32.mrb[39].mxu1 }
 0x329   : > { %v1304_v39 = vmul.f32 0.01, %v1196_v27  ;;  %v1306_v40 = vmul.f32 0.01, %v1269_v28  ;;  %v1200_v41 = vadd.f32 %v1199_v37, %v1095_v10  ;;  %v1273_v42 = vadd.f32 %v1272_v38, %v1095_v10  ;;  %1419 = vmatprep.subr.bf16.mxu0 %v1360_v31  ;;  %1472 = vmatprep.subr.bf16.mxu1 %v1362_v32 }
 0x32a   : > { %v1307_v43 = vmul.f32 0.01, %v1198_v35  ;;  %v1309_v44 = vmul.f32 0.01, %v1271_v36  ;;  %1420 = vmatpush1.bf16.msra.mxu0 %v1359_v21  ;;  %1473 = vmatpush1.bf16.msra.mxu1 %v1361_v22  ;;  %v1335_v49 = vmax.f32 %v1194_v23, %v1303_v33  ;;  %v1337_v50 = vmax.f32 %v1267_v24, %v1305_v34  ;;  %v1110_v22 = vpop.permute.xlu0 %1109  ;;  %v1115_v23 = vpop.permute.xlu1 %1114 }
 0x32b   : > { %v1308_v45 = vmul.f32 0.01, %v1200_v41  ;;  %v1310_v46 = vmul.f32 0.01, %v1273_v42  ;;  %v1336_v53 = vmax.f32 %v1196_v27, %v1304_v39  ;;  %v1338_v54 = vmax.f32 %v1269_v28, %v1306_v40 }
 0x32c   : > { %v1339_v51 = vmax.f32 %v1198_v35, %v1307_v43  ;;  %v1341_v52 = vmax.f32 %v1271_v36, %v1309_v44 }
 0x32d   : > { %v1340_v55 = vmax.f32 %v1200_v41, %v1308_v45  ;;  %v1342_v56 = vmax.f32 %v1273_v42, %v1310_v46  ;;  %v1203_v57 = vpop.f32.mrb[40].mxu0  ;;  %v1276_v58 = vpop.f32.mrb[40].mxu1 }
 0x32e   : > { %v1363_v59 = vpack.c.bf16 %v1339_v51, %v1335_v49  ;;  %v1365_v60 = vpack.c.bf16 %v1341_v52, %v1337_v50  ;;  %v1204_v61 = vadd.f32 %v1203_v57, %v1100_v47  ;;  %v1277_v62 = vadd.f32 %v1276_v58, %v1100_v47  ;;  %v1205_v63 = vpop.f32.mrb[41].mxu0  ;;  %v1278_v0 = vpop.f32.mrb[41].mxu1 }
 0x32f   : > { %v1206_v1 = vadd.f32 %v1205_v63, %v1100_v47  ;;  %v1279_v2 = vadd.f32 %v1278_v0, %v1100_v47  ;;  %v1207_v3 = vpop.f32.mrb[42].mxu0  ;;  %v1280_v4 = vpop.f32.mrb[42].mxu1  ;;  %v1364_v5 = vpack.c.bf16 %v1340_v55, %v1336_v53  ;;  %v1366_v6 = vpack.c.bf16 %v1342_v56, %v1338_v54 }
 0x330   : > { %v1311_v7 = vmul.f32 0.01, %v1204_v61  ;;  %v1313_v9 = vmul.f32 0.01, %v1277_v62  ;;  %v1208_v10 = vadd.f32 %v1207_v3, %v1105_v48  ;;  %v1281_v11 = vadd.f32 %v1280_v4, %v1105_v48  ;;  %v1209_v12 = vpop.f32.mrb[43].mxu0  ;;  %v1282_v13 = vpop.f32.mrb[43].mxu1 }
 0x331   : > { %v1312_v14 = vmul.f32 0.01, %v1206_v1  ;;  %v1314_v15 = vmul.f32 0.01, %v1279_v2  ;;  %v1210_v16 = vadd.f32 %v1209_v12, %v1105_v48  ;;  %v1283_v17 = vadd.f32 %v1282_v13, %v1105_v48  ;;  %1421 = vmatprep.subr.bf16.mxu0 %v1364_v5  ;;  %1474 = vmatprep.subr.bf16.mxu1 %v1366_v6  ;;  %v1391_v12 = vpop.permute.xlu1 %1390 }
 0x332   : > { %v1315_v18 = vmul.f32 0.01, %v1208_v10  ;;  %v1317_v19 = vmul.f32 0.01, %v1281_v11  ;;  %1422 = vmatpush1.bf16.msra.mxu0 %v1363_v59  ;;  %1475 = vmatpush1.bf16.msra.mxu1 %v1365_v60  ;;  %v1343_v24 = vmax.f32 %v1204_v61, %v1311_v7  ;;  %v1345_v25 = vmax.f32 %v1277_v62, %v1313_v9  ;;  %v1873_v9 = vld [vmem:[%s2373_s7] sm:$0xff]  }
 0x333   : > { %v1316_v20 = vmul.f32 0.01, %v1210_v16  ;;  %v1318_v21 = vmul.f32 0.01, %v1283_v17  ;;  %v1344_v28 = vmax.f32 %v1206_v1, %v1312_v14  ;;  %v1346_v29 = vmax.f32 %v1279_v2, %v1314_v15 }
 0x334   : > { %v1347_v26 = vmax.f32 %v1208_v10, %v1315_v18  ;;  %v1349_v27 = vmax.f32 %v1281_v11, %v1317_v19  ;;  %v1874_v10 = vld [vmem:[%s2373_s7 + $0x8] sm:$0xff]   ;;  %v1386_v11 = vpop.permute.xlu0 %1385 }
 0x335   : > { %v1348_v30 = vmax.f32 %v1210_v16, %v1316_v20  ;;  %v1350_v31 = vmax.f32 %v1283_v17, %v1318_v21  ;;  %v1213_v32 = vpop.f32.mrb[44].mxu0  ;;  %v1286_v33 = vpop.f32.mrb[44].mxu1 }
 0x336   : > { %v1367_v34 = vpack.c.bf16 %v1347_v26, %v1343_v24  ;;  %v1369_v35 = vpack.c.bf16 %v1349_v27, %v1345_v25  ;;  %v1214_v36 = vadd.f32 %v1213_v32, %v1110_v22  ;;  %v1287_v37 = vadd.f32 %v1286_v33, %v1110_v22  ;;  %v1215_v38 = vpop.f32.mrb[45].mxu0  ;;  %v1288_v39 = vpop.f32.mrb[45].mxu1 }
 0x337   : > { %v1216_v40 = vadd.f32 %v1215_v38, %v1110_v22  ;;  %v1289_v41 = vadd.f32 %v1288_v39, %v1110_v22  ;;  %v1217_v42 = vpop.f32.mrb[46].mxu0  ;;  %v1290_v43 = vpop.f32.mrb[46].mxu1  ;;  %v1368_v44 = vpack.c.bf16 %v1348_v30, %v1344_v28  ;;  %v1370_v45 = vpack.c.bf16 %v1350_v31, %v1346_v29 }
 0x338   : > { %v1319_v46 = vmul.f32 0.01, %v1214_v36  ;;  %v1321_v47 = vmul.f32 0.01, %v1287_v37  ;;  %v1218_v48 = vadd.f32 %v1217_v42, %v1115_v23  ;;  %v1291_v49 = vadd.f32 %v1290_v43, %v1115_v23  ;;  %v1219_v50 = vpop.f32.mrb[47].mxu0  ;;  %v1292_v51 = vpop.f32.mrb[47].mxu1 }
 0x339   : > { %v1320_v52 = vmul.f32 0.01, %v1216_v40  ;;  %v1322_v53 = vmul.f32 0.01, %v1289_v41  ;;  %v1220_v54 = vadd.f32 %v1219_v50, %v1115_v23  ;;  %v1293_v55 = vadd.f32 %v1292_v51, %v1115_v23  ;;  %1423 = vmatprep.subr.bf16.mxu0 %v1368_v44  ;;  %1476 = vmatprep.subr.bf16.mxu1 %v1370_v45 }
 0x33a   : > { %v1323_v56 = vmul.f32 0.01, %v1218_v48  ;;  %v1325_v57 = vmul.f32 0.01, %v1291_v49  ;;  %1424 = vmatpush1.bf16.msra.mxu0 %v1367_v34  ;;  %1477 = vmatpush1.bf16.msra.mxu1 %v1369_v35  ;;  %v1351_v60 = vmax.f32 %v1214_v36, %v1319_v46  ;;  %v1353_v61 = vmax.f32 %v1287_v37, %v1321_v47 }
 0x33b   : > { %v1324_v58 = vmul.f32 0.01, %v1220_v54  ;;  %v1326_v59 = vmul.f32 0.01, %v1293_v55  ;;  %v1352_v0 = vmax.f32 %v1216_v40, %v1320_v52  ;;  %v1354_v1 = vmax.f32 %v1289_v41, %v1322_v53  ;;  %v1396_v40 = vpop.permute.xlu0 %1395  ;;  %v1401_v41 = vpop.permute.xlu1 %1400 }
 0x33c   : > { %v1355_v62 = vmax.f32 %v1218_v48, %v1323_v56  ;;  %v1357_v63 = vmax.f32 %v1291_v49, %v1325_v57 }
 0x33d   : > { %v1356_v2 = vmax.f32 %v1220_v54, %v1324_v58  ;;  %v1358_v3 = vmax.f32 %v1293_v55, %v1326_v59 }
 0x33e   : > { %v1371_v4 = vpack.c.bf16 %v1355_v62, %v1351_v60  ;;  %v1373_v5 = vpack.c.bf16 %v1357_v63, %v1353_v61 }
 0x33f   : > { %v1372_v6 = vpack.c.bf16 %v1356_v2, %v1352_v0  ;;  %v1374_v7 = vpack.c.bf16 %v1358_v3, %v1354_v1 }
 0x341   : > { %1425 = vmatprep.subr.bf16.mxu0 %v1372_v6  ;;  %1478 = vmatprep.subr.bf16.mxu1 %v1374_v7 }
 0x342   : > { %1426 = vmatpush1.bf16.msra.mxu0 %v1371_v4  ;;  %1479 = vmatpush1.bf16.msra.mxu1 %v1373_v5 }
 0x345   : > { %1764 = vmatmul.mubr.msk.bf16.vlgmr.msra.gmra.mrb[48].mxu0 %vm822_vm1, %v1873_v9  ;;  %1766 = vmatmul.mubr.msk.bf16.vlgmr.msra.gmra.mrb[48].mxu1 %vm822_vm1, %v1873_v9 }
 0x346   : > { %1461 = vmatprep.mubr.bf16.mxu0 %v1974_v8  ;;  %1514 = vmatprep.mubr.bf16.mxu1 %v1974_v8 }
 0x34d   : > { %1765 = vmatmul.mubr.msk.bf16.gmra.mrb[52].mxu0 %vm822_vm1, %v1874_v10  ;;  %1767 = vmatmul.mubr.msk.bf16.gmra.mrb[52].mxu1 %vm822_vm1, %v1874_v10 }
 0x418   : > { %v1453_v13 = vpop.f32.mrb[48].mxu0  ;;  %v1506_v14 = vpop.f32.mrb[48].mxu1 }
 0x419   : > { %v1454_v15 = vadd.f32 %v1453_v13, %v1386_v11  ;;  %v1507_v16 = vadd.f32 %v1506_v14, %v1386_v11  ;;  %v1455_v17 = vpop.f32.mrb[49].mxu0  ;;  %v1508_v18 = vpop.f32.mrb[49].mxu1 }
 0x41a   : > { %v1456_v19 = vadd.f32 %v1455_v17, %v1386_v11  ;;  %v1509_v20 = vadd.f32 %v1508_v18, %v1386_v11  ;;  %v1457_v21 = vpop.f32.mrb[50].mxu0  ;;  %v1510_v8 = vpop.f32.mrb[50].mxu1 }
 0x41b   : > { %v1525_v22 = vmul.f32 0.01, %v1454_v15  ;;  %v1527_v23 = vmul.f32 0.01, %v1507_v16  ;;  %v1458_v24 = vadd.f32 %v1457_v21, %v1391_v12  ;;  %v1511_v25 = vadd.f32 %v1510_v8, %v1391_v12  ;;  %v1459_v26 = vpop.f32.mrb[51].mxu0  ;;  %v1512_v27 = vpop.f32.mrb[51].mxu1 }
 0x41c   : > { %v1526_v28 = vmul.f32 0.01, %v1456_v19  ;;  %v1528_v29 = vmul.f32 0.01, %v1509_v20  ;;  %v1460_v30 = vadd.f32 %v1459_v26, %v1391_v12  ;;  %v1513_v31 = vadd.f32 %v1512_v27, %v1391_v12 }
 0x41d   : > { %v1541_v32 = vmax.f32 %v1454_v15, %v1525_v22  ;;  %v1543_v33 = vmax.f32 %v1507_v16, %v1527_v23  ;;  %v1529_v34 = vmul.f32 0.01, %v1458_v24  ;;  %v1531_v35 = vmul.f32 0.01, %v1511_v25 }
 0x41e   : > { %v1542_v36 = vmax.f32 %v1456_v19, %v1526_v28  ;;  %v1544_v37 = vmax.f32 %v1509_v20, %v1528_v29  ;;  %v1530_v38 = vmul.f32 0.01, %v1460_v30  ;;  %v1532_v39 = vmul.f32 0.01, %v1513_v31 }
 0x41f   : > { %v1545_v42 = vmax.f32 %v1458_v24, %v1529_v34  ;;  %v1547_v43 = vmax.f32 %v1511_v25, %v1531_v35 }
 0x420   : > { %v1782_v44 = vpack.c.bf16 %v1542_v36, %v1541_v32  ;;  %v1783_v45 = vpack.c.bf16 %v1544_v37, %v1543_v33  ;;  %v1546_v46 = vmax.f32 %v1460_v30, %v1530_v38  ;;  %v1548_v47 = vmax.f32 %v1513_v31, %v1532_v39  ;;  %v1463_v48 = vpop.f32.mrb[52].mxu0  ;;  %v1516_v49 = vpop.f32.mrb[52].mxu1 }
 0x421   : > { %v1464_v50 = vadd.f32 %v1463_v48, %v1396_v40  ;;  %v1517_v51 = vadd.f32 %v1516_v49, %v1396_v40  ;;  %v1465_v52 = vpop.f32.mrb[53].mxu0  ;;  %v1518_v53 = vpop.f32.mrb[53].mxu1 }
 0x422   : > { %1605 = vst [vmem:[%s2304_s29] sm:$0xff] %v1782_v44  ;;  %1606 = vst [vmem:[%s2304_s29 + $0x8] sm:$0xff] %v1783_v45  ;;  %v1784_v54 = vpack.c.bf16 %v1546_v46, %v1545_v42  ;;  %v1785_v55 = vpack.c.bf16 %v1548_v47, %v1547_v43  ;;  %v1466_v56 = vadd.f32 %v1465_v52, %v1396_v40  ;;  %v1467_v58 = vpop.f32.mrb[54].mxu0  ;;  %v1520_v59 = vpop.f32.mrb[54].mxu1 }
 0x423   : > { %v1519_v57 = vadd.f32 %v1518_v53, %v1396_v40  ;;  %v1533_v60 = vmul.f32 0.01, %v1464_v50  ;;  %v1535_v61 = vmul.f32 0.01, %v1517_v51  ;;  %v1468_v62 = vadd.f32 %v1467_v58, %v1401_v41  ;;  %v1469_v0 = vpop.f32.mrb[55].mxu0  ;;  %v1522_v1 = vpop.f32.mrb[55].mxu1 }
 0x424   : > { %v1521_v63 = vadd.f32 %v1520_v59, %v1401_v41  ;;  %1607 = vst [vmem:[%s2304_s29 + $0x10] sm:$0xff] %v1784_v54  ;;  %1608 = vst [vmem:[%s2304_s29 + $0x18] sm:$0xff] %v1785_v55  ;;  %v1534_v2 = vmul.f32 0.01, %v1466_v56  ;;  %v1470_v4 = vadd.f32 %v1469_v0, %v1401_v41  ;;  %v1523_v5 = vadd.f32 %v1522_v1, %v1401_v41 }
 0x425   : > { %v1536_v3 = vmul.f32 0.01, %v1519_v57  ;;  %v1549_v6 = vmax.f32 %v1464_v50, %v1533_v60  ;;  %v1551_v7 = vmax.f32 %v1517_v51, %v1535_v61  ;;  %v1537_v9 = vmul.f32 0.01, %v1468_v62 }
 0x426   : > { %v1539_v10 = vmul.f32 0.01, %v1521_v63  ;;  %v1550_v11 = vmax.f32 %v1466_v56, %v1534_v2  ;;  %v1538_v13 = vmul.f32 0.01, %v1470_v4  ;;  %v1540_v14 = vmul.f32 0.01, %v1523_v5 }
 0x427   : > { %v1552_v12 = vmax.f32 %v1519_v57, %v1536_v3  ;;  %v1553_v15 = vmax.f32 %v1468_v62, %v1537_v9 }
 0x428   : > { %v1555_v16 = vmax.f32 %v1521_v63, %v1539_v10  ;;  %v1786_v17 = vpack.c.bf16 %v1550_v11, %v1549_v6  ;;  %v1554_v19 = vmax.f32 %v1470_v4, %v1538_v13  ;;  %v1556_v20 = vmax.f32 %v1523_v5, %v1540_v14 }
 0x429   : > { %v1787_v18 = vpack.c.bf16 %v1552_v12, %v1551_v7 }
 0x42a   : > { %1609 = vst [vmem:[%s2304_s29 + $0x20] sm:$0xff] %v1786_v17  ;;  %v1788_v21 = vpack.c.bf16 %v1554_v19, %v1553_v15  ;;  %v1789_v8 = vpack.c.bf16 %v1556_v20, %v1555_v16 }
 0x42b   : > { %1610 = vst [vmem:[%s2304_s29 + $0x28] sm:$0xff] %v1787_v18 }
 0x42c   : > { %1611 = vst [vmem:[%s2304_s29 + $0x30] sm:$0xff] %v1788_v21  ;;  %1612 = vst [vmem:[%s2304_s29 + $0x38] sm:$0xff] %v1789_v8 }
 0x42d   : > { %1916 = shalt.err (!%p1913_p9)
}
 0x42e   : > { %s1917_s18 = scalar_lea.hbm %s2317_s17, 1024  ;;  %s1921_s27 = scalar_lea.hbm %s2375_s9, 4096 }
 0x42f   : > { %p1918_p13 = scmp.ne.s32.totalorder %s2317_s17, %s1917_s18  ;;  %p1922_p5 = scmp.lt.u32.totalorder %s2317_s17, %s2375_s9 }
 0x430   : > { %p1923_p6 = scmp.lt.u32.totalorder %s1921_s27, %s1917_s18  ;;  %p1925_p11 = scmp.lt.u32.totalorder %s1917_s18, %s2317_s17 }
 0x431   : > { %p1919_p1 = pnand %p1918_p13, %p2392_p12 }
 0x432   : > { %p1924_p10 = por %p1923_p6, %p1922_p5 }
 0x433   : > { %p1920_p3 = pneg %p1919_p1 }
 0x434   : > { %p1926_p0 = por %p1925_p11, %p1924_p10 }
 0x436   : > { %p1927_p2 = pnand %p1926_p0, %p1920_p3 }
 0x438   : > { %1930 = shalt.err (!%p1927_p2)
}
 0x439   : > { %s1976_s28 = smov 256   ;;  %s1977_s16 = smov 1024  }
 0x43a   : > { %s1978_s23 = smov 16  }
 0x43b   : > { %1795 = dma.vmem_to_hbm [thread:$0]  (%p2392_p12), %s2312_s19, 1024, %s2317_s17, %s2325_s13, %s1976_s28, %s1977_s16, %s1978_s23  }
 0x43c PF: > { %p1807_p4 = scmp.ge.s32.totalorder %s1969_s12, 2  ;;  %s1642_s25 = sand.u32 1, %s1957_s30  }
 0x43d   : > { %p2393_p7 = scmp.ne.s32.totalorder %s2385_s21, 0  ;;  %s1643_s24 = scalar_lea.sflag [#allocation5], %s1642_s25 }
 0x43f   : > { %p1802_p8 = pnand %p1807_p4, %p2393_p7 }
 0x441   : > { %1952 = dma.done.wait (!%p1802_p8), %s1643_s24, 1024  }
 0x442   : > { %1954 = vsyncadd (!%p1802_p8), %s1643_s24, 4294966272  ;;  %s2394_s12 = sld [smem:[#allocation9_spill]]  ;;  %s2395_s15 = sld [smem:[#allocation10_spill]] }
 0x443   : > { %s2396_s30 = smov %s1961_s10  ;;  %s2397_s10 = smov %s1965_s11 }
 0x448   : > { %p20_p9 = scmp.ge.s32.totalorder %s2394_s12, 6   ;;  %s2398_s11 = smov %s2395_s15 }
 0x44a   :  { %22 = sbr.rel (!%p20_p9) target bundleno = 4 (0x4), region = 124 }
 0x451   :  { %1648 = vsyncpa [#allocation4], 1 }
 0x452   :  { %1650 = vsyncpa [#allocation4 + $0x1], 1 }
 0x453   :  { %1651 = vsyncpa [#allocation5], 1 }
 0x454   :  { %1653 = vsyncpa [#allocation5 + $0x1], 1 }

</bundles_post_ra>
